<compile_context>
chip_gen: v5e
topology: v5e:2x2
jax: 0.10.0
libtpu: 0.0.40
codegen_flags: <defaults>
</compile_context>

<pallas_src>
import jax
import jax.numpy as jnp
from jax.experimental import pallas as pl
from jax.experimental.pallas import tpu as pltpu


def _relu_kernel(x_ref, o_ref):
    # Elementwise ReLU: single VPU max against an immediate zero.
    o_ref[...] = jnp.maximum(x_ref[...], 0.0)


@jax.jit
def relu_pallas(x: jax.Array) -> jax.Array:
    """ReLU implemented as a single-block Pallas TPU kernel (NCHW input)."""
    orig_shape = x.shape
    total = x.size

    if total % 128 == 0:
        # Lane-dense slab: last (lane) dim exactly 128 -> all full-width stores.
        x2d = x.reshape(total // 128, 128)
    else:
        # Fallback: keep trailing dim on lanes (may incur masked partial stores).
        x2d = x.reshape(-1, orig_shape[-1])

    out2d = pl.pallas_call(
        _relu_kernel,
        out_shape=jax.ShapeDtypeStruct(x2d.shape, x2d.dtype),
        in_specs=[pl.BlockSpec(memory_space=pltpu.MemorySpace.VMEM)],
        out_specs=pl.BlockSpec(memory_space=pltpu.MemorySpace.VMEM),
        input_output_aliases={0: 0},
    )(x2d)

    return out2d.reshape(orig_shape)


if __name__ == "__main__":
    key = jax.random.PRNGKey(0)
    # Shape implied by the module's forward: [1, 192, 14, 14] (NCHW); 37632 = 294*128.
    x = jax.random.normal(key, (1, 192, 14, 14), dtype=jnp.float32)

    # Reference computed before the kernel call (kernel output aliases its input slab).
    ref = jnp.maximum(x, 0.0)

    y = relu_pallas(x)
    jax.block_until_ready(y)

    assert y.shape == x.shape and y.dtype == x.dtype
    assert bool(jnp.allclose(y, ref)), "ReLU mismatch vs reference"

    print("KERNEL_OK")
</pallas_src>

<mosaic_0001>
module attributes {stable_mosaic.version = 11 : i64} {
  func.func @_relu_kernel(%arg0: memref<294x128xf32, #tpu.memory_space<vmem>>, %arg1: memref<294x128xf32, #tpu.memory_space<vmem>>) attributes {dimension_semantics = [], scalar_prefetch = 0 : i64, scratch_operands = 0 : i64, tpu.core_type = #tpu.core_type<tc>} {
    %c0 = arith.constant 0 : index
    %c0_0 = arith.constant 0 : index
    %0 = vector.load %arg0[%c0, %c0_0] : memref<294x128xf32, #tpu.memory_space<vmem>>, vector<294x128xf32>
    %cst = arith.constant 0.000000e+00 : f32
    %1 = vector.broadcast %cst : f32 to vector<294x128xf32>
    %2 = arith.maximumf %0, %1 : vector<294x128xf32>
    %c0_1 = arith.constant 0 : index
    %c0_2 = arith.constant 0 : index
    %3 = vector.load %arg1[%c0_1, %c0_2] : memref<294x128xf32, #tpu.memory_space<vmem>>, vector<294x128xf32>
    tpu.vector_store %arg1[%c0_1, %c0_2], %2 {strides = array<i32>} : memref<294x128xf32, #tpu.memory_space<vmem>>, vector<294x128xf32>,
    return
  }
}

</mosaic_0001>

<bundles_post_ra>
// kernel: relu_pallas.1
= control target key start
LH: loop header
LB: loop body
LE: loop exit
PB: predicated region body
PF: predicated region fallthrough
CT: control target
= control target key end

     0   :  { %s355_s0 = inlined_call_operand.vmem [shape: f32[294,128], index: 0, kind: input, shape index: {}, may-alias: {0,1}]   ;;  %s356_s1 = inlined_call_operand.vmem [shape: f32[294,128], index: 1, kind: output, shape index: {}, may-alias: {0,1}]  }
   0x1   :  { %v8_v0 = vld [vmem:[%s355_s0] sm:$0xff]  ;;  %v9_v1 = vld [vmem:[%s355_s0 + $0x8] sm:$0xff]  ;;  %v10_v2 = vld [vmem:[%s355_s0 + $0x10] sm:$0xff] }
   0x2   :  { %v45_v3 = vmax.f32 %v8_v0, 0.0  ;;  %v46_v4 = vmax.f32 %v9_v1, 0.0  ;;  %v47_v5 = vmax.f32 %v10_v2, 0.0  ;;  %v11_v6 = vld [vmem:[%s355_s0 + $0x18] sm:$0xff]  ;;  %v12_v7 = vld [vmem:[%s355_s0 + $0x20] sm:$0xff]  ;;  %v13_v8 = vld [vmem:[%s355_s0 + $0x28] sm:$0xff] }
   0x3   :  { %v48_v9 = vmax.f32 %v11_v6, 0.0  ;;  %v14_v10 = vld [vmem:[%s355_s0 + $0x30] sm:$0xff]  ;;  %v49_v11 = vmax.f32 %v12_v7, 0.0  ;;  %v50_v13 = vmax.f32 %v13_v8, 0.0 }
   0x4   :  { %82 = vst [vmem:[%s356_s1] sm:$0xff] %v45_v3  ;;  %v51_v15 = vmax.f32 %v14_v10, 0.0 }
   0xb   :  { %v15_v12 = vld [vmem:[%s355_s0 + $0x38] sm:$0xff] }
   0xc   :  { %83 = vst [vmem:[%s356_s1 + $0x8] sm:$0xff] %v46_v4  ;;  %v52_v17 = vmax.f32 %v15_v12, 0.0 }
  0x13   :  { %v16_v14 = vld [vmem:[%s355_s0 + $0x40] sm:$0xff] }
  0x14   :  { %84 = vst [vmem:[%s356_s1 + $0x10] sm:$0xff] %v47_v5  ;;  %v53_v19 = vmax.f32 %v16_v14, 0.0 }
  0x1b   :  { %v17_v16 = vld [vmem:[%s355_s0 + $0x48] sm:$0xff] }
  0x1c   :  { %85 = vst [vmem:[%s356_s1 + $0x18] sm:$0xff] %v48_v9  ;;  %v54_v21 = vmax.f32 %v17_v16, 0.0 }
  0x23   :  { %v18_v18 = vld [vmem:[%s355_s0 + $0x50] sm:$0xff] }
  0x24   :  { %86 = vst [vmem:[%s356_s1 + $0x20] sm:$0xff] %v49_v11  ;;  %v55_v23 = vmax.f32 %v18_v18, 0.0 }
  0x2b   :  { %v19_v20 = vld [vmem:[%s355_s0 + $0x58] sm:$0xff] }
  0x2c   :  { %87 = vst [vmem:[%s356_s1 + $0x28] sm:$0xff] %v50_v13  ;;  %v56_v25 = vmax.f32 %v19_v20, 0.0 }
  0x33   :  { %v20_v22 = vld [vmem:[%s355_s0 + $0x60] sm:$0xff] }
  0x34   :  { %88 = vst [vmem:[%s356_s1 + $0x30] sm:$0xff] %v51_v15  ;;  %v57_v27 = vmax.f32 %v20_v22, 0.0 }
  0x3b   :  { %v21_v24 = vld [vmem:[%s355_s0 + $0x68] sm:$0xff] }
  0x3c   :  { %89 = vst [vmem:[%s356_s1 + $0x38] sm:$0xff] %v52_v17  ;;  %v58_v29 = vmax.f32 %v21_v24, 0.0 }
  0x43   :  { %v22_v26 = vld [vmem:[%s355_s0 + $0x70] sm:$0xff] }
  0x44   :  { %90 = vst [vmem:[%s356_s1 + $0x40] sm:$0xff] %v53_v19  ;;  %v59_v31 = vmax.f32 %v22_v26, 0.0 }
  0x4b   :  { %v23_v28 = vld [vmem:[%s355_s0 + $0x78] sm:$0xff] }
  0x4c   :  { %91 = vst [vmem:[%s356_s1 + $0x48] sm:$0xff] %v54_v21  ;;  %v60_v33 = vmax.f32 %v23_v28, 0.0 }
  0x53   :  { %v24_v30 = vld [vmem:[%s355_s0 + $0x80] sm:$0xff] }
  0x54   :  { %92 = vst [vmem:[%s356_s1 + $0x50] sm:$0xff] %v55_v23  ;;  %v61_v35 = vmax.f32 %v24_v30, 0.0 }
  0x5b   :  { %v25_v32 = vld [vmem:[%s355_s0 + $0x88] sm:$0xff] }
  0x5c   :  { %93 = vst [vmem:[%s356_s1 + $0x58] sm:$0xff] %v56_v25  ;;  %v62_v37 = vmax.f32 %v25_v32, 0.0 }
  0x63   :  { %v26_v34 = vld [vmem:[%s355_s0 + $0x90] sm:$0xff] }
  0x64   :  { %94 = vst [vmem:[%s356_s1 + $0x60] sm:$0xff] %v57_v27  ;;  %v63_v39 = vmax.f32 %v26_v34, 0.0 }
  0x6b   :  { %v27_v36 = vld [vmem:[%s355_s0 + $0x98] sm:$0xff] }
  0x6c   :  { %95 = vst [vmem:[%s356_s1 + $0x68] sm:$0xff] %v58_v29  ;;  %v64_v41 = vmax.f32 %v27_v36, 0.0 }
  0x73   :  { %v28_v38 = vld [vmem:[%s355_s0 + $0xa0] sm:$0xff] }
  0x74   :  { %96 = vst [vmem:[%s356_s1 + $0x70] sm:$0xff] %v59_v31  ;;  %v65_v43 = vmax.f32 %v28_v38, 0.0 }
  0x7b   :  { %v29_v40 = vld [vmem:[%s355_s0 + $0xa8] sm:$0xff] }
  0x7c   :  { %97 = vst [vmem:[%s356_s1 + $0x78] sm:$0xff] %v60_v33  ;;  %v66_v45 = vmax.f32 %v29_v40, 0.0 }
  0x83   :  { %v30_v42 = vld [vmem:[%s355_s0 + $0xb0] sm:$0xff] }
  0x84   :  { %98 = vst [vmem:[%s356_s1 + $0x80] sm:$0xff] %v61_v35  ;;  %v67_v47 = vmax.f32 %v30_v42, 0.0 }
  0x8b   :  { %v31_v44 = vld [vmem:[%s355_s0 + $0xb8] sm:$0xff] }
  0x8c   :  { %99 = vst [vmem:[%s356_s1 + $0x88] sm:$0xff] %v62_v37  ;;  %v68_v49 = vmax.f32 %v31_v44, 0.0 }
  0x93   :  { %v32_v46 = vld [vmem:[%s355_s0 + $0xc0] sm:$0xff] }
  0x94   :  { %100 = vst [vmem:[%s356_s1 + $0x90] sm:$0xff] %v63_v39  ;;  %v69_v51 = vmax.f32 %v32_v46, 0.0 }
  0x9b   :  { %v33_v48 = vld [vmem:[%s355_s0 + $0xc8] sm:$0xff] }
  0x9c   :  { %101 = vst [vmem:[%s356_s1 + $0x98] sm:$0xff] %v64_v41  ;;  %v70_v53 = vmax.f32 %v33_v48, 0.0 }
  0xa3   :  { %v34_v50 = vld [vmem:[%s355_s0 + $0xd0] sm:$0xff] }
  0xa4   :  { %102 = vst [vmem:[%s356_s1 + $0xa0] sm:$0xff] %v65_v43  ;;  %v71_v55 = vmax.f32 %v34_v50, 0.0 }
  0xab   :  { %v35_v52 = vld [vmem:[%s355_s0 + $0xd8] sm:$0xff] }
  0xac   :  { %103 = vst [vmem:[%s356_s1 + $0xa8] sm:$0xff] %v66_v45  ;;  %v72_v57 = vmax.f32 %v35_v52, 0.0 }
  0xb3   :  { %v36_v54 = vld [vmem:[%s355_s0 + $0xe0] sm:$0xff] }
  0xb4   :  { %104 = vst [vmem:[%s356_s1 + $0xb0] sm:$0xff] %v67_v47  ;;  %v73_v59 = vmax.f32 %v36_v54, 0.0 }
  0xbb   :  { %v37_v56 = vld [vmem:[%s355_s0 + $0xe8] sm:$0xff] }
  0xbc   :  { %105 = vst [vmem:[%s356_s1 + $0xb8] sm:$0xff] %v68_v49  ;;  %v74_v61 = vmax.f32 %v37_v56, 0.0 }
  0xc3   :  { %v38_v58 = vld [vmem:[%s355_s0 + $0xf0] sm:$0xff] }
  0xc4   :  { %106 = vst [vmem:[%s356_s1 + $0xc0] sm:$0xff] %v69_v51  ;;  %v75_v63 = vmax.f32 %v38_v58, 0.0 }
  0xcb   :  { %v39_v60 = vld [vmem:[%s355_s0 + $0xf8] sm:$0xff] }
  0xcc   :  { %107 = vst [vmem:[%s356_s1 + $0xc8] sm:$0xff] %v70_v53  ;;  %v76_v1 = vmax.f32 %v39_v60, 0.0 }
  0xd3   :  { %v40_v62 = vld [vmem:[%s355_s0 + $0x100] sm:$0xff] }
  0xd4   :  { %108 = vst [vmem:[%s356_s1 + $0xd0] sm:$0xff] %v71_v55  ;;  %v77_v3 = vmax.f32 %v40_v62, 0.0 }
  0xdb   :  { %v41_v0 = vld [vmem:[%s355_s0 + $0x108] sm:$0xff] }
  0xdc   :  { %109 = vst [vmem:[%s356_s1 + $0xd8] sm:$0xff] %v72_v57  ;;  %v78_v5 = vmax.f32 %v41_v0, 0.0 }
  0xe3   :  { %v42_v2 = vld [vmem:[%s355_s0 + $0x110] sm:$0xff] }
  0xe4   :  { %110 = vst [vmem:[%s356_s1 + $0xe0] sm:$0xff] %v73_v59  ;;  %v79_v7 = vmax.f32 %v42_v2, 0.0 }
  0xeb   :  { %v43_v4 = vld [vmem:[%s355_s0 + $0x118] sm:$0xff] }
  0xec   :  { %111 = vst [vmem:[%s356_s1 + $0xe8] sm:$0xff] %v74_v61  ;;  %v80_v8 = vmax.f32 %v43_v4, 0.0 }
  0xf3   :  { %v44_v6 = vld [vmem:[%s355_s0 + $0x120] sm:$0x3f] }
  0xf4   :  { %112 = vst [vmem:[%s356_s1 + $0xf0] sm:$0xff] %v75_v63  ;;  %v81_v9 = vmax.f32 %v44_v6, 0.0 }
  0xf5   :  { %113 = vst [vmem:[%s356_s1 + $0xf8] sm:$0xff] %v76_v1 }
  0xf6   :  { %114 = vst [vmem:[%s356_s1 + $0x100] sm:$0xff] %v77_v3 }
  0xf7   :  { %115 = vst [vmem:[%s356_s1 + $0x108] sm:$0xff] %v78_v5 }
  0xf8   :  { %116 = vst [vmem:[%s356_s1 + $0x110] sm:$0xff] %v79_v7 }
  0xf9   :  { %117 = vst [vmem:[%s356_s1 + $0x118] sm:$0xff] %v80_v8 }
  0xfa   :  { %118 = vst [vmem:[%s356_s1 + $0x120] sm:$0x3f] %v81_v9 }

</bundles_post_ra>
